<compile_context>
chip_gen: v7x
topology: tpu7x:2x2x1
jax: 0.10.0
libtpu: 0.0.40
codegen_flags: <defaults>
</compile_context>

<pallas_src>
import functools

import jax
import jax.numpy as jnp
from jax.experimental import pallas as pl
from jax.experimental.pallas import tpu as pltpu

import numpy as np


_HALF_LOG_2PI = 0.5 * float(np.log(2.0 * np.pi))
_LOG_2 = float(np.log(2.0))

_WEIGHT_BUFFER_MODE = {"single": None}   # None = unknown, True/False = cached
_NUM_TC_CACHE = {"n": None}


def _round_up(n: int, m: int) -> int:
    return ((n + m - 1) // m) * m


def _num_tensorcores() -> int:
    """Best-effort TensorCore count (v7x has 2/chip); defaults to 1."""
    if _NUM_TC_CACHE["n"] is None:
        n = 1
        try:
            info = pltpu.get_tpu_info()
            for attr in ("num_cores", "core_count", "num_tensorcores",
                         "tensorcore_count", "tensorcores_per_chip"):
                v = getattr(info, attr, None)
                if isinstance(v, int) and v > 0:
                    n = v
                    break
        except Exception:
            pass
        if n == 1:
            try:
                v = getattr(jax.devices()[0], "num_cores", None)
                if isinstance(v, int) and v > 0:
                    n = v
            except Exception:
                pass
        _NUM_TC_CACHE["n"] = int(n)
    return _NUM_TC_CACHE["n"]


def _const_block_spec(shape, index_map, single_buffer: bool):
    """BlockSpec for a grid-invariant operand; single-buffered if supported."""
    if single_buffer and hasattr(pl, "Buffered"):
        try:
            return pl.BlockSpec(shape, index_map, pipeline_mode=pl.Buffered(1))
        except Exception:
            pass
    return pl.BlockSpec(shape, index_map)


def _actor_kernel(*refs, max_action: float, has_eps: bool, with_logprob: bool,
                  action_dim: int, matmul_dtype):
    if has_eps:
        (x_ref, w1_ref, b1_ref, w2_ref, b2_ref,
         wm_ref, bm_ref, ws_ref, bs_ref, eps_ref, out_ref) = refs
    else:
        (x_ref, w1_ref, b1_ref, w2_ref, b2_ref,
         wm_ref, bm_ref, ws_ref, bs_ref, out_ref) = refs
        eps_ref = None

    mm = matmul_dtype
    x = x_ref[...]
    if x.dtype != mm:
        x = x.astype(mm)

    # l1 + ReLU (weights arrive already in the matmul dtype; accumulate in f32)
    h1 = jnp.dot(x, w1_ref[...], preferred_element_type=jnp.float32) + b1_ref[...]
    h1 = jnp.maximum(h1, 0.0)
    if h1.dtype != mm:
        h1 = h1.astype(mm)

    # l2 + ReLU
    h2 = jnp.dot(h1, w2_ref[...], preferred_element_type=jnp.float32) + b2_ref[...]
    h2 = jnp.maximum(h2, 0.0)
    if h2.dtype != mm:
        h2 = h2.astype(mm)

    # Two independent, tile-aligned head matmuls (mean / log_std).
    mean = jnp.dot(h2, wm_ref[...], preferred_element_type=jnp.float32) + bm_ref[...]
    log_std = jnp.dot(h2, ws_ref[...], preferred_element_type=jnp.float32) + bs_ref[...]
    log_std = jnp.clip(log_std, -20.0, 2.0)
    std = jnp.exp(log_std)

    # rsample: a = mean + std * eps  (eps ~ N(0,1), generated outside).
    if has_eps:
        eps = eps_ref[...]
        a = mean + std * eps
    else:
        a = mean

    a_sq = max_action * jnp.tanh(a)

    # Lane-dense output slab: zero-init the full 128-lane block (one dense
    # store + one dense output DMA), then place action / log_pi lanes.
    out_ref[...] = jnp.zeros_like(out_ref)
    out_ref[:, :action_dim] = a_sq.astype(out_ref.dtype)

    if with_logprob:
        # Normal(mean, std).log_prob(a): (a - mean)/std == eps exactly
        # (== 0 in the deterministic branch), so no divide is needed.
        if has_eps:
            z2 = eps * eps
        else:
            z2 = jnp.zeros_like(a)
        log_prob = -0.5 * z2 - log_std - _HALF_LOG_2PI
        # tanh squash correction 2*(log2 - a - softplus(-2a)); -2a reused.
        m2a = -2.0 * a
        corr = 2.0 * (_LOG_2 - a - jnp.logaddexp(jnp.zeros_like(a), m2a))
        log_pi = jnp.sum(log_prob - corr, axis=1, keepdims=True)
        out_ref[:, action_dim:action_dim + 1] = log_pi.astype(out_ref.dtype)


def prepare_actor_params(params, matmul_dtype=jnp.bfloat16):
    """One-time param prep: cast weights to the MXU dtype, biases -> (1, out) f32."""
    def w(name):
        return params[name].astype(matmul_dtype)

    def b(name):
        return params[name].reshape(1, -1).astype(jnp.float32)

    return dict(w1=w("w1"), b1=b("b1"), w2=w("w2"), b2=b("b2"),
                wm=w("wm"), bm=b("bm"), ws=w("ws"), bs=b("bs"))


def actor_forward(x, prep, eps=None, *, max_action, deterministic=False,
                  with_logprob=True, block_rows=1024):
    """SAC Actor forward pass as one gridded Pallas TPU kernel.

    x:    (B, state_dim) float32
    prep: output of `prepare_actor_params` (weights (in, out), biases (1, out))
    eps:  (B, action_dim) float32 standard-normal noise for rsample();
          required when deterministic=False, ignored (may be None) otherwise.
    Returns (a, log_pi): (B, action_dim) and (B, 1); log_pi is None when
    with_logprob=False (matching the PyTorch module).
    """
    B, state_dim = x.shape
    assert prep["w1"].shape[0] == state_dim
    hidden = prep["w1"].shape[1]
    action_dim = prep["wm"].shape[1]
    matmul_dtype = prep["w1"].dtype
    has_eps = not deterministic

    if has_eps:
        if eps is None:
            raise ValueError("eps is required when deterministic=False")
        assert eps.shape == (B, action_dim)

    used_lanes = action_dim + (1 if with_logprob else 0)
    out_lanes = max(128, _round_up(used_lanes, 128))

    # Batch tile: multiple of 8 sublanes, as large as block_rows allows.
    b_pad8 = _round_up(max(B, 1), 8)
    tb = min(_round_up(max(int(block_rows), 8), 8), b_pad8)
    # >=2 TensorCores (v7x): keep at least 2 grid steps so both cores get work.
    if _num_tensorcores() >= 2 and b_pad8 >= 16 and -(-B // tb) < 2:
        tb = min(tb, _round_up(-(-b_pad8 // 2), 8))
    b_pad = _round_up(B, tb)
    if b_pad != B:
        x = jnp.pad(x, ((0, b_pad - B), (0, 0)))
        if has_eps:
            eps = jnp.pad(eps, ((0, b_pad - B), (0, 0)))
    grid = (b_pad // tb,)

    args = [x, prep["w1"], prep["b1"], prep["w2"], prep["b2"],
            prep["wm"], prep["bm"], prep["ws"], prep["bs"]]
    if has_eps:
        args.append(eps)

    # Explicit scoped-VMEM budget from the actual working set (cap 64 MiB
    # so it is safe even on v7x's smaller physical VMEM).
    wsize = int(prep["w1"].dtype.itemsize)
    weight_bytes = (state_dim * hidden + hidden * hidden
                    + 2 * hidden * action_dim) * wsize
    bias_bytes = (2 * hidden + 2 * action_dim) * 4
    stream_bytes = tb * (state_dim + (action_dim if has_eps else 0) + out_lanes) * 4
    scratch_bytes = 4 * tb * hidden * 4
    vmem_est = 2 * (weight_bytes + bias_bytes) + 2 * stream_bytes + scratch_bytes
    vmem_limit = int(min(max(2 * vmem_est, 8 << 20), 64 << 20))

    kernel = functools.partial(
        _actor_kernel,
        max_action=float(max_action),
        has_eps=has_eps,
        with_logprob=bool(with_logprob),
        action_dim=int(action_dim),
        matmul_dtype=matmul_dtype,
    )

    row_map = lambda i: (i, 0)
    const_map = lambda i: (0, 0)

    def launch(single_buffer_weights: bool):
        in_specs = [
            pl.BlockSpec((tb, state_dim), row_map),                              # x
            _const_block_spec((state_dim, hidden), const_map, single_buffer_weights),  # w1
            _const_block_spec((1, hidden), const_map, single_buffer_weights),          # b1
            _const_block_spec((hidden, hidden), const_map, single_buffer_weights),     # w2
            _const_block_spec((1, hidden), const_map, single_buffer_weights),          # b2
            _const_block_spec((hidden, action_dim), const_map, single_buffer_weights), # wm
            _const_block_spec((1, action_dim), const_map, single_buffer_weights),      # bm
            _const_block_spec((hidden, action_dim), const_map, single_buffer_weights), # ws
            _const_block_spec((1, action_dim), const_map, single_buffer_weights),      # bs
        ]
        if has_eps:
            in_specs.append(pl.BlockSpec((tb, action_dim), row_map))             # eps
        return pl.pallas_call(
            kernel,
            out_shape=jax.ShapeDtypeStruct((b_pad, out_lanes), jnp.float32),
            grid=grid,
            in_specs=in_specs,
            out_specs=pl.BlockSpec((tb, out_lanes), row_map),
            compiler_params=pltpu.CompilerParams(
                dimension_semantics=("parallel",),
                vmem_limit_bytes=vmem_limit),
        )(*args)

    mode = _WEIGHT_BUFFER_MODE["single"]
    if mode is None:
        # Probe once whether single-buffered constant operands are supported.
        try:
            out = launch(True)
            jax.block_until_ready(out)
            _WEIGHT_BUFFER_MODE["single"] = True
        except Exception:
            _WEIGHT_BUFFER_MODE["single"] = False
            out = launch(False)
    else:
        out = launch(mode)

    out = out[:B]
    a = out[:, :action_dim]
    log_pi = out[:, action_dim:action_dim + 1] if with_logprob else None
    return a, log_pi


def init_actor_params(key, state_dim, hidden_width, action_dim):
    """Deterministic PyTorch-style (uniform +-1/sqrt(fan_in)) init, f32."""
    def linear(k, fan_in, fan_out):
        kw, kb = jax.random.split(k)
        bound = 1.0 / np.sqrt(fan_in)
        w = jax.random.uniform(kw, (fan_in, fan_out), jnp.float32, -bound, bound)
        b = jax.random.uniform(kb, (fan_out,), jnp.float32, -bound, bound)
        return w, b

    k1, k2, k3, k4 = jax.random.split(key, 4)
    w1, b1 = linear(k1, state_dim, hidden_width)
    w2, b2 = linear(k2, hidden_width, hidden_width)
    wm, bm = linear(k3, hidden_width, action_dim)
    ws, bs = linear(k4, hidden_width, action_dim)
    return dict(w1=w1, b1=b1, w2=w2, b2=b2, wm=wm, bm=bm, ws=ws, bs=bs)


def _reference(x, p, eps, max_action, deterministic, with_logprob):
    h1 = jax.nn.relu(x @ p["w1"] + p["b1"])
    h2 = jax.nn.relu(h1 @ p["w2"] + p["b2"])
    mean = h2 @ p["wm"] + p["bm"]
    log_std = jnp.clip(h2 @ p["ws"] + p["bs"], -20.0, 2.0)
    std = jnp.exp(log_std)
    a = mean if deterministic else mean + std * eps
    if with_logprob:
        lp = (-0.5 * ((a - mean) / std) ** 2 - log_std
              - 0.5 * np.log(2 * np.pi)).sum(axis=1, keepdims=True)
        lp -= (2 * (np.log(2.0) - a - jax.nn.softplus(-2 * a))).sum(
            axis=1, keepdims=True)
    else:
        lp = None
    return max_action * jnp.tanh(a), lp


if __name__ == "__main__":
    state_dim, action_dim, hidden_width = 16, 4, 32
    max_action = 2.0

    key = jax.random.PRNGKey(0)
    k_params, k_x, k_eps = jax.random.split(key, 3)
    params = init_actor_params(k_params, state_dim, hidden_width, action_dim)

    prep_f32 = prepare_actor_params(params, matmul_dtype=jnp.float32)
    prep_bf16 = prepare_actor_params(params)  # default: bf16 MXU path

    # --- Test 1: stochastic + log_prob, f32 matmuls (strict tolerance) ---
    B = 8
    x = jax.random.normal(k_x, (B, state_dim), jnp.float32)
    eps = jax.random.normal(k_eps, (B, action_dim), jnp.float32)
    a, log_pi = actor_forward(x, prep_f32, eps, max_action=max_action,
                              deterministic=False, with_logprob=True)
    jax.block_until_ready((a, log_pi))
    a_ref, lp_ref = _reference(x, params, eps, max_action, False, True)
    np.testing.assert_allclose(np.asarray(a), np.asarray(a_ref),
                               rtol=1e-5, atol=1e-5)
    np.testing.assert_allclose(np.asarray(log_pi), np.asarray(lp_ref),
                               rtol=1e-5, atol=1e-5)

    # --- Test 2: multi-step grid with row padding (B=20, tb=8) ---
    B2 = 20
    kx2, ke2 = jax.random.split(jax.random.PRNGKey(1))
    x2 = jax.random.normal(kx2, (B2, state_dim), jnp.float32)
    eps2 = jax.random.normal(ke2, (B2, action_dim), jnp.float32)
    a2, lp2 = actor_forward(x2, prep_f32, eps2, max_action=max_action,
                            deterministic=False, with_logprob=True,
                            block_rows=8)
    jax.block_until_ready((a2, lp2))
    a2_ref, lp2_ref = _reference(x2, params, eps2, max_action, False, True)
    np.testing.assert_allclose(np.asarray(a2), np.asarray(a2_ref),
                               rtol=1e-5, atol=1e-5)
    np.testing.assert_allclose(np.asarray(lp2), np.asarray(lp2_ref),
                               rtol=1e-5, atol=1e-5)

    # --- Test 3: deterministic, no log_prob, no eps input at all ---
    a3, lp3 = actor_forward(x, prep_f32, None, max_action=max_action,
                            deterministic=True, with_logprob=False)
    jax.block_until_ready(a3)
    a3_ref, _ = _reference(x, params, jnp.zeros_like(eps), max_action, True, False)
    assert lp3 is None
    np.testing.assert_allclose(np.asarray(a3), np.asarray(a3_ref),
                               rtol=1e-5, atol=1e-5)

    # --- Test 4: default bf16 MXU path (looser tolerance) ---
    a4, lp4 = actor_forward(x, prep_bf16, eps, max_action=max_action,
                            deterministic=False, with_logprob=True)
    jax.block_until_ready((a4, lp4))
    np.testing.assert_allclose(np.asarray(a4), np.asarray(a_ref),
                               rtol=5e-2, atol=5e-2)
    np.testing.assert_allclose(np.asarray(lp4), np.asarray(lp_ref),
                               rtol=5e-2, atol=2e-1)

    print("KERNEL_OK")
</pallas_src>

<mosaic_0001>
module attributes {stable_mosaic.version = 11 : i64} {
  func.func @_actor_kernel(%arg0: i32, %arg1: memref<8x16xf32, #tpu.memory_space<vmem>>, %arg2: memref<16x32xf32, #tpu.memory_space<vmem>>, %arg3: memref<1x32xf32, #tpu.memory_space<vmem>>, %arg4: memref<32x32xf32, #tpu.memory_space<vmem>>, %arg5: memref<1x32xf32, #tpu.memory_space<vmem>>, %arg6: memref<32x4xf32, #tpu.memory_space<vmem>>, %arg7: memref<1x4xf32, #tpu.memory_space<vmem>>, %arg8: memref<32x4xf32, #tpu.memory_space<vmem>>, %arg9: memref<1x4xf32, #tpu.memory_space<vmem>>, %arg10: memref<8x4xf32, #tpu.memory_space<vmem>>, %arg11: memref<8x128xf32, #tpu.memory_space<vmem>>) attributes {dimension_semantics = [#tpu.dimension_semantics<parallel>], iteration_bounds = array<i64: 1>, scalar_prefetch = 0 : i64, scratch_operands = 0 : i64, tpu.core_type = #tpu.core_type<tc>, window_params = [{transform_indices = @transform_0, window_bounds = array<i64: 8, 16>}, {pipeline_mode = #tpu.pipeline_mode<synchronous>, transform_indices = @transform_1, window_bounds = array<i64: 16, 32>}, {pipeline_mode = #tpu.pipeline_mode<synchronous>, transform_indices = @transform_2, window_bounds = array<i64: 1, 32>}, {pipeline_mode = #tpu.pipeline_mode<synchronous>, transform_indices = @transform_3, window_bounds = array<i64: 32, 32>}, {pipeline_mode = #tpu.pipeline_mode<synchronous>, transform_indices = @transform_4, window_bounds = array<i64: 1, 32>}, {pipeline_mode = #tpu.pipeline_mode<synchronous>, transform_indices = @transform_5, window_bounds = array<i64: 32, 4>}, {pipeline_mode = #tpu.pipeline_mode<synchronous>, transform_indices = @transform_6, window_bounds = array<i64: 1, 4>}, {pipeline_mode = #tpu.pipeline_mode<synchronous>, transform_indices = @transform_7, window_bounds = array<i64: 32, 4>}, {pipeline_mode = #tpu.pipeline_mode<synchronous>, transform_indices = @transform_8, window_bounds = array<i64: 1, 4>}, {transform_indices = @transform_9, window_bounds = array<i64: 8, 4>}, {transform_indices = @transform_10, window_bounds = array<i64: 8, 128>}]} {
    %c0 = arith.constant 0 : index
    %c0_0 = arith.constant 0 : index
    %0 = vector.load %arg1[%c0, %c0_0] : memref<8x16xf32, #tpu.memory_space<vmem>>, vector<8x16xf32>
    %c0_1 = arith.constant 0 : index
    %c0_2 = arith.constant 0 : index
    %1 = vector.load %arg2[%c0_1, %c0_2] : memref<16x32xf32, #tpu.memory_space<vmem>>, vector<16x32xf32>
    %cst = arith.constant dense<0.000000e+00> : vector<8x32xf32>
    %2 = tpu.matmul %0, %1, %cst {dimension_numbers = #tpu.dot_dimension_numbers<[1], [0], [0], [1], [0, 0, 1, 1], [], []>} : vector<8x16xf32>, vector<16x32xf32>, vector<8x32xf32> -> vector<8x32xf32>
    %c0_3 = arith.constant 0 : index
    %c0_4 = arith.constant 0 : index
    %3 = vector.load %arg3[%c0_3, %c0_4] : memref<1x32xf32, #tpu.memory_space<vmem>>, vector<1x32xf32>
    %4 = vector.broadcast %3 : vector<1x32xf32> to vector<8x32xf32>
    %5 = arith.addf %2, %4 : vector<8x32xf32>
    %cst_5 = arith.constant 0.000000e+00 : f32
    %6 = vector.broadcast %cst_5 : f32 to vector<8x32xf32>
    %7 = arith.maximumf %5, %6 : vector<8x32xf32>
    %c0_6 = arith.constant 0 : index
    %c0_7 = arith.constant 0 : index
    %8 = vector.load %arg4[%c0_6, %c0_7] : memref<32x32xf32, #tpu.memory_space<vmem>>, vector<32x32xf32>
    %cst_8 = arith.constant dense<0.000000e+00> : vector<8x32xf32>
    %9 = tpu.matmul %7, %8, %cst_8 {dimension_numbers = #tpu.dot_dimension_numbers<[1], [0], [0], [1], [0, 0, 1, 1], [], []>} : vector<8x32xf32>, vector<32x32xf32>, vector<8x32xf32> -> vector<8x32xf32>
    %c0_9 = arith.constant 0 : index
    %c0_10 = arith.constant 0 : index
    %10 = vector.load %arg5[%c0_9, %c0_10] : memref<1x32xf32, #tpu.memory_space<vmem>>, vector<1x32xf32>
    %11 = vector.broadcast %10 : vector<1x32xf32> to vector<8x32xf32>
    %12 = arith.addf %9, %11 : vector<8x32xf32>
    %cst_11 = arith.constant 0.000000e+00 : f32
    %13 = vector.broadcast %cst_11 : f32 to vector<8x32xf32>
    %14 = arith.maximumf %12, %13 : vector<8x32xf32>
    %c0_12 = arith.constant 0 : index
    %c0_13 = arith.constant 0 : index
    %15 = vector.load %arg6[%c0_12, %c0_13] : memref<32x4xf32, #tpu.memory_space<vmem>>, vector<32x4xf32>
    %cst_14 = arith.constant dense<0.000000e+00> : vector<8x4xf32>
    %16 = tpu.matmul %14, %15, %cst_14 {dimension_numbers = #tpu.dot_dimension_numbers<[1], [0], [0], [1], [0, 0, 1, 1], [], []>} : vector<8x32xf32>, vector<32x4xf32>, vector<8x4xf32> -> vector<8x4xf32>
    %c0_15 = arith.constant 0 : index
    %c0_16 = arith.constant 0 : index
    %17 = vector.load %arg7[%c0_15, %c0_16] : memref<1x4xf32, #tpu.memory_space<vmem>>, vector<1x4xf32>
    %18 = vector.broadcast %17 : vector<1x4xf32> to vector<8x4xf32>
    %19 = arith.addf %16, %18 : vector<8x4xf32>
    %c0_17 = arith.constant 0 : index
    %c0_18 = arith.constant 0 : index
    %20 = vector.load %arg8[%c0_17, %c0_18] : memref<32x4xf32, #tpu.memory_space<vmem>>, vector<32x4xf32>
    %cst_19 = arith.constant dense<0.000000e+00> : vector<8x4xf32>
    %21 = tpu.matmul %14, %20, %cst_19 {dimension_numbers = #tpu.dot_dimension_numbers<[1], [0], [0], [1], [0, 0, 1, 1], [], []>} : vector<8x32xf32>, vector<32x4xf32>, vector<8x4xf32> -> vector<8x4xf32>
    %c0_20 = arith.constant 0 : index
    %c0_21 = arith.constant 0 : index
    %22 = vector.load %arg9[%c0_20, %c0_21] : memref<1x4xf32, #tpu.memory_space<vmem>>, vector<1x4xf32>
    %23 = vector.broadcast %22 : vector<1x4xf32> to vector<8x4xf32>
    %24 = arith.addf %21, %23 : vector<8x4xf32>
    %cst_22 = arith.constant -2.000000e+01 : f32
    %cst_23 = arith.constant 2.000000e+00 : f32
    %25 = vector.broadcast %cst_22 : f32 to vector<8x4xf32>
    %26 = arith.maximumf %25, %24 : vector<8x4xf32>
    %27 = vector.broadcast %cst_23 : f32 to vector<8x4xf32>
    %28 = arith.minimumf %27, %26 : vector<8x4xf32>
    %29 = math.exp %28 : vector<8x4xf32>
    %c0_24 = arith.constant 0 : index
    %c0_25 = arith.constant 0 : index
    %30 = vector.load %arg10[%c0_24, %c0_25] : memref<8x4xf32, #tpu.memory_space<vmem>>, vector<8x4xf32>
    %31 = arith.mulf %29, %30 : vector<8x4xf32>
    %32 = arith.addf %19, %31 : vector<8x4xf32>
    %33 = math.tanh %32 : vector<8x4xf32>
    %cst_26 = arith.constant 2.000000e+00 : f32
    %34 = vector.broadcast %cst_26 : f32 to vector<8x4xf32>
    %35 = arith.mulf %34, %33 : vector<8x4xf32>
    %cst_27 = arith.constant 0.000000e+00 : f32
    %36 = vector.broadcast %cst_27 : f32 to vector<8x128xf32>
    %c0_28 = arith.constant 0 : index
    %c0_29 = arith.constant 0 : index
    %37 = vector.load %arg11[%c0_28, %c0_29] : memref<8x128xf32, #tpu.memory_space<vmem>>, vector<8x128xf32>
    tpu.vector_store %arg11[%c0_28, %c0_29], %36 {strides = array<i32>} : memref<8x128xf32, #tpu.memory_space<vmem>>, vector<8x128xf32>,
    %c0_30 = arith.constant 0 : index
    %c0_31 = arith.constant 0 : index
    %38 = vector.load %arg11[%c0_30, %c0_31] : memref<8x128xf32, #tpu.memory_space<vmem>>, vector<8x4xf32>
    tpu.vector_store %arg11[%c0_30, %c0_31], %35 {strides = array<i32>} : memref<8x128xf32, #tpu.memory_space<vmem>>, vector<8x4xf32>,
    %39 = arith.mulf %30, %30 : vector<8x4xf32>
    %cst_32 = arith.constant -5.000000e-01 : f32
    %40 = vector.broadcast %cst_32 : f32 to vector<8x4xf32>
    %41 = arith.mulf %40, %39 : vector<8x4xf32>
    %42 = arith.subf %41, %28 : vector<8x4xf32>
    %cst_33 = arith.constant 0.918938517 : f32
    %43 = vector.broadcast %cst_33 : f32 to vector<8x4xf32>
    %44 = arith.subf %42, %43 : vector<8x4xf32>
    %cst_34 = arith.constant -2.000000e+00 : f32
    %45 = vector.broadcast %cst_34 : f32 to vector<8x4xf32>
    %46 = arith.mulf %45, %32 : vector<8x4xf32>
    %cst_35 = arith.constant 0.693147182 : f32
    %47 = vector.broadcast %cst_35 : f32 to vector<8x4xf32>
    %48 = arith.subf %47, %32 : vector<8x4xf32>
    %cst_36 = arith.constant 0.000000e+00 : f32
    %49 = vector.broadcast %cst_36 : f32 to vector<8x4xf32>
    %50 = arith.maximumf %49, %46 : vector<8x4xf32>
    %51 = arith.subf %49, %46 : vector<8x4xf32>
    %52 = arith.cmpf one, %51, %51 : vector<8x4xf32>
    %53 = arith.addf %49, %46 : vector<8x4xf32>
    %54 = math.absf %51 : vector<8x4xf32>
    %cst_37 = arith.constant 0.000000e+00 : f32
    %55 = vector.broadcast %cst_37 : f32 to vector<8x4xf32>
    %56 = arith.subf %55, %54 : vector<8x4xf32>
    %57 = math.exp %56 : vector<8x4xf32>
    %58 = math.log1p %57 : vector<8x4xf32>
    %59 = arith.addf %50, %58 : vector<8x4xf32>
    %60 = arith.select %52, %53, %59 : vector<8x4xi1>, vector<8x4xf32>
    %61 = arith.subf %48, %60 : vector<8x4xf32>
    %cst_38 = arith.constant 2.000000e+00 : f32
    %62 = vector.broadcast %cst_38 : f32 to vector<8x4xf32>
    %63 = arith.mulf %62, %61 : vector<8x4xf32>
    %64 = arith.subf %44, %63 : vector<8x4xf32>
    %cst_39 = arith.constant dense<0.000000e+00> : vector<8xf32>
    %65 = vector.multi_reduction <add>, %64, %cst_39 [1] : vector<8x4xf32> to vector<8xf32>
    %66 = vector.shape_cast %65 : vector<8xf32> to vector<8x1xf32>
    %c0_40 = arith.constant 0 : index
    %c4 = arith.constant 4 : index
    %67 = vector.load %arg11[%c0_40, %c4] : memref<8x128xf32, #tpu.memory_space<vmem>>, vector<8x1xf32>
    tpu.vector_store %arg11[%c0_40, %c4], %66 {strides = array<i32>} : memref<8x128xf32, #tpu.memory_space<vmem>>, vector<8x1xf32>,
    return
  }
  func.func @transform_0(%arg0: i32) -> (i32, i32) {
    %c0_i32 = arith.constant 0 : i32
    %c0_i32_0 = arith.constant 0 : i32
    return %arg0, %c0_i32 : i32, i32
  }
  func.func @transform_1(%arg0: i32) -> (i32, i32) {
    %c0_i32 = arith.constant 0 : i32
    %c0_i32_0 = arith.constant 0 : i32
    %c0_i32_1 = arith.constant 0 : i32
    return %c0_i32, %c0_i32_0 : i32, i32
  }
  func.func @transform_2(%arg0: i32) -> (i32, i32) {
    %c0_i32 = arith.constant 0 : i32
    %c0_i32_0 = arith.constant 0 : i32
    %c0_i32_1 = arith.constant 0 : i32
    return %c0_i32, %c0_i32_0 : i32, i32
  }
  func.func @transform_3(%arg0: i32) -> (i32, i32) {
    %c0_i32 = arith.constant 0 : i32
    %c0_i32_0 = arith.constant 0 : i32
    %c0_i32_1 = arith.constant 0 : i32
    return %c0_i32, %c0_i32_0 : i32, i32
  }
  func.func @transform_4(%arg0: i32) -> (i32, i32) {
    %c0_i32 = arith.constant 0 : i32
    %c0_i32_0 = arith.constant 0 : i32
    %c0_i32_1 = arith.constant 0 : i32
    return %c0_i32, %c0_i32_0 : i32, i32
  }
  func.func @transform_5(%arg0: i32) -> (i32, i32) {
    %c0_i32 = arith.constant 0 : i32
    %c0_i32_0 = arith.constant 0 : i32
    %c0_i32_1 = arith.constant 0 : i32
    return %c0_i32, %c0_i32_0 : i32, i32
  }
  func.func @transform_6(%arg0: i32) -> (i32, i32) {
    %c0_i32 = arith.constant 0 : i32
    %c0_i32_0 = arith.constant 0 : i32
    %c0_i32_1 = arith.constant 0 : i32
    return %c0_i32, %c0_i32_0 : i32, i32
  }
  func.func @transform_7(%arg0: i32) -> (i32, i32) {
    %c0_i32 = arith.constant 0 : i32
    %c0_i32_0 = arith.constant 0 : i32
    %c0_i32_1 = arith.constant 0 : i32
    return %c0_i32, %c0_i32_0 : i32, i32
  }
  func.func @transform_8(%arg0: i32) -> (i32, i32) {
    %c0_i32 = arith.constant 0 : i32
    %c0_i32_0 = arith.constant 0 : i32
    %c0_i32_1 = arith.constant 0 : i32
    return %c0_i32, %c0_i32_0 : i32, i32
  }
  func.func @transform_9(%arg0: i32) -> (i32, i32) {
    %c0_i32 = arith.constant 0 : i32
    %c0_i32_0 = arith.constant 0 : i32
    return %arg0, %c0_i32 : i32, i32
  }
  func.func @transform_10(%arg0: i32) -> (i32, i32) {
    %c0_i32 = arith.constant 0 : i32
    %c0_i32_0 = arith.constant 0 : i32
    return %arg0, %c0_i32 : i32, i32
  }
}

module attributes {stable_mosaic.version = 11 : i64} {
  func.func @_actor_kernel(%arg0: i32, %arg1: memref<8x16xf32, #tpu.memory_space<vmem>>, %arg2: memref<16x32xf32, #tpu.memory_space<vmem>>, %arg3: memref<1x32xf32, #tpu.memory_space<vmem>>, %arg4: memref<32x32xf32, #tpu.memory_space<vmem>>, %arg5: memref<1x32xf32, #tpu.memory_space<vmem>>, %arg6: memref<32x4xf32, #tpu.memory_space<vmem>>, %arg7: memref<1x4xf32, #tpu.memory_space<vmem>>, %arg8: memref<32x4xf32, #tpu.memory_space<vmem>>, %arg9: memref<1x4xf32, #tpu.memory_space<vmem>>, %arg10: memref<8x4xf32, #tpu.memory_space<vmem>>, %arg11: memref<8x128xf32, #tpu.memory_space<vmem>>) attributes {dimension_semantics = [#tpu.dimension_semantics<parallel>], iteration_bounds = array<i64: 1>, scalar_prefetch = 0 : i64, scratch_operands = 0 : i64, tpu.core_type = #tpu.core_type<tc>, window_params = [{transform_indices = @transform_0, window_bounds = array<i64: 8, 16>}, {pipeline_mode = #tpu.pipeline_mode<synchronous>, transform_indices = @transform_1, window_bounds = array<i64: 16, 32>}, {pipeline_mode = #tpu.pipeline_mode<synchronous>, transform_indices = @transform_2, window_bounds = array<i64: 1, 32>}, {pipeline_mode = #tpu.pipeline_mode<synchronous>, transform_indices = @transform_3, window_bounds = array<i64: 32, 32>}, {pipeline_mode = #tpu.pipeline_mode<synchronous>, transform_indices = @transform_4, window_bounds = array<i64: 1, 32>}, {pipeline_mode = #tpu.pipeline_mode<synchronous>, transform_indices = @transform_5, window_bounds = array<i64: 32, 4>}, {pipeline_mode = #tpu.pipeline_mode<synchronous>, transform_indices = @transform_6, window_bounds = array<i64: 1, 4>}, {pipeline_mode = #tpu.pipeline_mode<synchronous>, transform_indices = @transform_7, window_bounds = array<i64: 32, 4>}, {pipeline_mode = #tpu.pipeline_mode<synchronous>, transform_indices = @transform_8, window_bounds = array<i64: 1, 4>}, {transform_indices = @transform_9, window_bounds = array<i64: 8, 4>}, {transform_indices = @transform_10, window_bounds = array<i64: 8, 128>}]} {
    %c0 = arith.constant 0 : index
    %c0_0 = arith.constant 0 : index
    %0 = vector.load %arg1[%c0, %c0_0] : memref<8x16xf32, #tpu.memory_space<vmem>>, vector<8x16xf32>
    %c0_1 = arith.constant 0 : index
    %c0_2 = arith.constant 0 : index
    %1 = vector.load %arg2[%c0_1, %c0_2] : memref<16x32xf32, #tpu.memory_space<vmem>>, vector<16x32xf32>
    %cst = arith.constant dense<0.000000e+00> : vector<8x32xf32>
    %2 = tpu.matmul %0, %1, %cst {dimension_numbers = #tpu.dot_dimension_numbers<[1], [0], [0], [1], [0, 0, 1, 1], [], []>} : vector<8x16xf32>, vector<16x32xf32>, vector<8x32xf32> -> vector<8x32xf32>
    %c0_3 = arith.constant 0 : index
    %c0_4 = arith.constant 0 : index
    %3 = vector.load %arg3[%c0_3, %c0_4] : memref<1x32xf32, #tpu.memory_space<vmem>>, vector<1x32xf32>
    %4 = vector.broadcast %3 : vector<1x32xf32> to vector<8x32xf32>
    %5 = arith.addf %2, %4 : vector<8x32xf32>
    %cst_5 = arith.constant 0.000000e+00 : f32
    %6 = vector.broadcast %cst_5 : f32 to vector<8x32xf32>
    %7 = arith.maximumf %5, %6 : vector<8x32xf32>
    %c0_6 = arith.constant 0 : index
    %c0_7 = arith.constant 0 : index
    %8 = vector.load %arg4[%c0_6, %c0_7] : memref<32x32xf32, #tpu.memory_space<vmem>>, vector<32x32xf32>
    %cst_8 = arith.constant dense<0.000000e+00> : vector<8x32xf32>
    %9 = tpu.matmul %7, %8, %cst_8 {dimension_numbers = #tpu.dot_dimension_numbers<[1], [0], [0], [1], [0, 0, 1, 1], [], []>} : vector<8x32xf32>, vector<32x32xf32>, vector<8x32xf32> -> vector<8x32xf32>
    %c0_9 = arith.constant 0 : index
    %c0_10 = arith.constant 0 : index
    %10 = vector.load %arg5[%c0_9, %c0_10] : memref<1x32xf32, #tpu.memory_space<vmem>>, vector<1x32xf32>
    %11 = vector.broadcast %10 : vector<1x32xf32> to vector<8x32xf32>
    %12 = arith.addf %9, %11 : vector<8x32xf32>
    %cst_11 = arith.constant 0.000000e+00 : f32
    %13 = vector.broadcast %cst_11 : f32 to vector<8x32xf32>
    %14 = arith.maximumf %12, %13 : vector<8x32xf32>
    %c0_12 = arith.constant 0 : index
    %c0_13 = arith.constant 0 : index
    %15 = vector.load %arg6[%c0_12, %c0_13] : memref<32x4xf32, #tpu.memory_space<vmem>>, vector<32x4xf32>
    %cst_14 = arith.constant dense<0.000000e+00> : vector<8x4xf32>
    %16 = tpu.matmul %14, %15, %cst_14 {dimension_numbers = #tpu.dot_dimension_numbers<[1], [0], [0], [1], [0, 0, 1, 1], [], []>} : vector<8x32xf32>, vector<32x4xf32>, vector<8x4xf32> -> vector<8x4xf32>
    %c0_15 = arith.constant 0 : index
    %c0_16 = arith.constant 0 : index
    %17 = vector.load %arg7[%c0_15, %c0_16] : memref<1x4xf32, #tpu.memory_space<vmem>>, vector<1x4xf32>
    %18 = vector.broadcast %17 : vector<1x4xf32> to vector<8x4xf32>
    %19 = arith.addf %16, %18 : vector<8x4xf32>
    %c0_17 = arith.constant 0 : index
    %c0_18 = arith.constant 0 : index
    %20 = vector.load %arg8[%c0_17, %c0_18] : memref<32x4xf32, #tpu.memory_space<vmem>>, vector<32x4xf32>
    %cst_19 = arith.constant dense<0.000000e+00> : vector<8x4xf32>
    %21 = tpu.matmul %14, %20, %cst_19 {dimension_numbers = #tpu.dot_dimension_numbers<[1], [0], [0], [1], [0, 0, 1, 1], [], []>} : vector<8x32xf32>, vector<32x4xf32>, vector<8x4xf32> -> vector<8x4xf32>
    %c0_20 = arith.constant 0 : index
    %c0_21 = arith.constant 0 : index
    %22 = vector.load %arg9[%c0_20, %c0_21] : memref<1x4xf32, #tpu.memory_space<vmem>>, vector<1x4xf32>
    %23 = vector.broadcast %22 : vector<1x4xf32> to vector<8x4xf32>
    %24 = arith.addf %21, %23 : vector<8x4xf32>
    %cst_22 = arith.constant -2.000000e+01 : f32
    %cst_23 = arith.constant 2.000000e+00 : f32
    %25 = vector.broadcast %cst_22 : f32 to vector<8x4xf32>
    %26 = arith.maximumf %25, %24 : vector<8x4xf32>
    %27 = vector.broadcast %cst_23 : f32 to vector<8x4xf32>
    %28 = arith.minimumf %27, %26 : vector<8x4xf32>
    %29 = math.exp %28 : vector<8x4xf32>
    %c0_24 = arith.constant 0 : index
    %c0_25 = arith.constant 0 : index
    %30 = vector.load %arg10[%c0_24, %c0_25] : memref<8x4xf32, #tpu.memory_space<vmem>>, vector<8x4xf32>
    %31 = arith.mulf %29, %30 : vector<8x4xf32>
    %32 = arith.addf %19, %31 : vector<8x4xf32>
    %33 = math.tanh %32 : vector<8x4xf32>
    %cst_26 = arith.constant 2.000000e+00 : f32
    %34 = vector.broadcast %cst_26 : f32 to vector<8x4xf32>
    %35 = arith.mulf %34, %33 : vector<8x4xf32>
    %cst_27 = arith.constant 0.000000e+00 : f32
    %36 = vector.broadcast %cst_27 : f32 to vector<8x128xf32>
    %c0_28 = arith.constant 0 : index
    %c0_29 = arith.constant 0 : index
    %37 = vector.load %arg11[%c0_28, %c0_29] : memref<8x128xf32, #tpu.memory_space<vmem>>, vector<8x128xf32>
    tpu.vector_store %arg11[%c0_28, %c0_29], %36 {strides = array<i32>} : memref<8x128xf32, #tpu.memory_space<vmem>>, vector<8x128xf32>,
    %c0_30 = arith.constant 0 : index
    %c0_31 = arith.constant 0 : index
    %38 = vector.load %arg11[%c0_30, %c0_31] : memref<8x128xf32, #tpu.memory_space<vmem>>, vector<8x4xf32>
    tpu.vector_store %arg11[%c0_30, %c0_31], %35 {strides = array<i32>} : memref<8x128xf32, #tpu.memory_space<vmem>>, vector<8x4xf32>,
    %39 = arith.mulf %30, %30 : vector<8x4xf32>
    %cst_32 = arith.constant -5.000000e-01 : f32
    %40 = vector.broadcast %cst_32 : f32 to vector<8x4xf32>
    %41 = arith.mulf %40, %39 : vector<8x4xf32>
    %42 = arith.subf %41, %28 : vector<8x4xf32>
    %cst_33 = arith.constant 0.918938517 : f32
    %43 = vector.broadcast %cst_33 : f32 to vector<8x4xf32>
    %44 = arith.subf %42, %43 : vector<8x4xf32>
    %cst_34 = arith.constant -2.000000e+00 : f32
    %45 = vector.broadcast %cst_34 : f32 to vector<8x4xf32>
    %46 = arith.mulf %45, %32 : vector<8x4xf32>
    %cst_35 = arith.constant 0.693147182 : f32
    %47 = vector.broadcast %cst_35 : f32 to vector<8x4xf32>
    %48 = arith.subf %47, %32 : vector<8x4xf32>
    %cst_36 = arith.constant 0.000000e+00 : f32
    %49 = vector.broadcast %cst_36 : f32 to vector<8x4xf32>
    %50 = arith.maximumf %49, %46 : vector<8x4xf32>
    %51 = arith.subf %49, %46 : vector<8x4xf32>
    %52 = arith.cmpf one, %51, %51 : vector<8x4xf32>
    %53 = arith.addf %49, %46 : vector<8x4xf32>
    %54 = math.absf %51 : vector<8x4xf32>
    %cst_37 = arith.constant 0.000000e+00 : f32
    %55 = vector.broadcast %cst_37 : f32 to vector<8x4xf32>
    %56 = arith.subf %55, %54 : vector<8x4xf32>
    %57 = math.exp %56 : vector<8x4xf32>
    %58 = math.log1p %57 : vector<8x4xf32>
    %59 = arith.addf %50, %58 : vector<8x4xf32>
    %60 = arith.select %52, %53, %59 : vector<8x4xi1>, vector<8x4xf32>
    %61 = arith.subf %48, %60 : vector<8x4xf32>
    %cst_38 = arith.constant 2.000000e+00 : f32
    %62 = vector.broadcast %cst_38 : f32 to vector<8x4xf32>
    %63 = arith.mulf %62, %61 : vector<8x4xf32>
    %64 = arith.subf %44, %63 : vector<8x4xf32>
    %cst_39 = arith.constant dense<0.000000e+00> : vector<8xf32>
    %65 = vector.multi_reduction <add>, %64, %cst_39 [1] : vector<8x4xf32> to vector<8xf32>
    %66 = vector.shape_cast %65 : vector<8xf32> to vector<8x1xf32>
    %c0_40 = arith.constant 0 : index
    %c4 = arith.constant 4 : index
    %67 = vector.load %arg11[%c0_40, %c4] : memref<8x128xf32, #tpu.memory_space<vmem>>, vector<8x1xf32>
    tpu.vector_store %arg11[%c0_40, %c4], %66 {strides = array<i32>} : memref<8x128xf32, #tpu.memory_space<vmem>>, vector<8x1xf32>,
    return
  }
  func.func @transform_0(%arg0: i32) -> (i32, i32) {
    %c0_i32 = arith.constant 0 : i32
    %c0_i32_0 = arith.constant 0 : i32
    return %arg0, %c0_i32 : i32, i32
  }
  func.func @transform_1(%arg0: i32) -> (i32, i32) {
    %c0_i32 = arith.constant 0 : i32
    %c0_i32_0 = arith.constant 0 : i32
    %c0_i32_1 = arith.constant 0 : i32
    return %c0_i32, %c0_i32_0 : i32, i32
  }
  func.func @transform_2(%arg0: i32) -> (i32, i32) {
    %c0_i32 = arith.constant 0 : i32
    %c0_i32_0 = arith.constant 0 : i32
    %c0_i32_1 = arith.constant 0 : i32
    return %c0_i32, %c0_i32_0 : i32, i32
  }
  func.func @transform_3(%arg0: i32) -> (i32, i32) {
    %c0_i32 = arith.constant 0 : i32
    %c0_i32_0 = arith.constant 0 : i32
    %c0_i32_1 = arith.constant 0 : i32
    return %c0_i32, %c0_i32_0 : i32, i32
  }
  func.func @transform_4(%arg0: i32) -> (i32, i32) {
    %c0_i32 = arith.constant 0 : i32
    %c0_i32_0 = arith.constant 0 : i32
    %c0_i32_1 = arith.constant 0 : i32
    return %c0_i32, %c0_i32_0 : i32, i32
  }
  func.func @transform_5(%arg0: i32) -> (i32, i32) {
    %c0_i32 = arith.constant 0 : i32
    %c0_i32_0 = arith.constant 0 : i32
    %c0_i32_1 = arith.constant 0 : i32
    return %c0_i32, %c0_i32_0 : i32, i32
  }
  func.func @transform_6(%arg0: i32) -> (i32, i32) {
    %c0_i32 = arith.constant 0 : i32
    %c0_i32_0 = arith.constant 0 : i32
    %c0_i32_1 = arith.constant 0 : i32
    return %c0_i32, %c0_i32_0 : i32, i32
  }
  func.func @transform_7(%arg0: i32) -> (i32, i32) {
    %c0_i32 = arith.constant 0 : i32
    %c0_i32_0 = arith.constant 0 : i32
    %c0_i32_1 = arith.constant 0 : i32
    return %c0_i32, %c0_i32_0 : i32, i32
  }
  func.func @transform_8(%arg0: i32) -> (i32, i32) {
    %c0_i32 = arith.constant 0 : i32
    %c0_i32_0 = arith.constant 0 : i32
    %c0_i32_1 = arith.constant 0 : i32
    return %c0_i32, %c0_i32_0 : i32, i32
  }
  func.func @transform_9(%arg0: i32) -> (i32, i32) {
    %c0_i32 = arith.constant 0 : i32
    %c0_i32_0 = arith.constant 0 : i32
    return %arg0, %c0_i32 : i32, i32
  }
  func.func @transform_10(%arg0: i32) -> (i32, i32) {
    %c0_i32 = arith.constant 0 : i32
    %c0_i32_0 = arith.constant 0 : i32
    return %arg0, %c0_i32 : i32, i32
  }
}

</mosaic_0001>

<bundles_post_ra>
// kernel: tpu_custom_call.1
= control target key start
LH: loop header
LB: loop body
LE: loop exit
PB: predicated region body
PF: predicated region fallthrough
CT: control target
= control target key end

     0   :  { %v555_v2 = vmov 0.0|0.0   ;;  %vm556_vm0 = vmmov 0   ;;  %v557_v4 = vmov 0.0   ;;  %s695_s0 = inlined_call_operand.vmem [shape: f32[8,16], index: 0, kind: input, shape index: {}]   ;;  %s696_s1 = inlined_call_operand.vmem [shape: f32[16,32], index: 1, kind: input, shape index: {}]   ;;  %s697_s2 = inlined_call_operand.vmem [shape: f32[1,32], index: 2, kind: input, shape index: {}]   ;;  %s698_s3 = inlined_call_operand.vmem [shape: f32[32,32], index: 3, kind: input, shape index: {}]   ;;  %s699_s4 = inlined_call_operand.vmem [shape: f32[1,32], index: 4, kind: input, shape index: {}]   ;;  %s700_s5 = inlined_call_operand.vmem [shape: f32[32,4], index: 5, kind: input, shape index: {}]   ;;  %s701_s6 = inlined_call_operand.vmem [shape: f32[1,4], index: 6, kind: input, shape index: {}]   ;;  %s702_s7 = inlined_call_operand.vmem [shape: f32[32,4], index: 7, kind: input, shape index: {}]   ;;  %s703_s8 = inlined_call_operand.vmem [shape: f32[1,4], index: 8, kind: input, shape index: {}]   ;;  %s704_s9 = inlined_call_operand.vmem [shape: f32[8,4], index: 9, kind: input, shape index: {}]   ;;  %s705_s10 = inlined_call_operand.hbm [shape: f32[8,128], index: 10, kind: output, shape index: {}]  }
   0x1   :  { %v37_v0 = vld [vmem:[%s696_s1] sm:$0xff]  ;;  %v38_v1 = vld [vmem:[%s696_s1 + $0x8] sm:$0xff]  ;;  %498 = vmatprep.subr.bf16.mxu0 %v555_v2  ;;  %462 = vmatprep.mubr.msk.f32.mxu0 %vm556_vm0, %v557_v4  ;;  %381 = vst [vmem:[#allocation2] sm:$0xff] %v557_v4 }
   0x2   :  { %v499_v3 = vpack.c.bf16 %v38_v1, %v37_v0  ;;  %v121_v5 = vld [vmem:[%s698_s3] sm:$0xff]  ;;  %v122_v6 = vld [vmem:[%s698_s3 + $0x8] sm:$0xff]  ;;  %501 = vmatprep.subr.bf16.mxu1 %v555_v2  ;;  %473 = vmatprep.mubr.msk.f32.mxu1 %vm556_vm0, %v557_v4 }
   0x3   :  { %v502_v7 = vpack.c.bf16 %v122_v6, %v121_v5 }
   0x4   :  { %15 = vsyncpa [#allocation3], 0  ;;  %500 = vmatpush3.bf16.msra.mxu0 %v499_v3  ;;  %v36_v8 = vld [vmem:[%s695_s0] sm:$0xff]  ;;  %vm46_vm1 = vcmask 130048   ;;  %v123_v9 = vld [vmem:[%s698_s3 + $0x10] sm:$0xff]  ;;  %vm132_vm2 = vcmask 261120  }
   0x5   :  { %503 = vmatpush3.bf16.msra.mxu1 %v502_v7  ;;  %507 = vmatprep.subr.bf16.mxu0 %v555_v2  ;;  %v124_v10 = vld [vmem:[%s698_s3 + $0x18] sm:$0xff]  ;;  %v207_v12 = vld [vmem:[%s700_s5] sm:$0xff]  ;;  %v208_v13 = vld [vmem:[%s700_s5 + $0x8] sm:$0xff]  ;;  %vm382_vm3 = vcmask 31744   ;;  %vm415_vm6 = vcmask 39968  }
   0x6   :  { %504 = vmatprep.subr.bf16.mxu1 %v555_v2  ;;  %v505_v11 = vpack.c.bf16 %v124_v10, %v123_v9  ;;  %v508_v14 = vpack.c.bf16 %v208_v13, %v207_v12  ;;  %v431_v15 = vld [vmem:[%s697_s2] ss:$0 sm:$0xff]  ;;  %v292_v17 = vld [vmem:[%s702_s7 + $0x8] sm:$0xff]  ;;  %v209_v23 = vld [vmem:[%s700_s5 + $0x10] sm:$0xff] }
   0x7   :  { %463 = vmatmul.mubr.msk.f32.vlgmr.msra.gmra.mrb[0].mxu0 %vm46_vm1, %v36_v8  ;;  %v291_v16 = vld [vmem:[%s702_s7] sm:$0xff]  ;;  %v210_v24 = vld [vmem:[%s700_s5 + $0x18] sm:$0xff]  ;;  %v293_v25 = vld [vmem:[%s702_s7 + $0x10] sm:$0xff] }
   0x8   :  { %484 = vmatprep.mubr.msk.f32.mxu0 %vm556_vm0, %v557_v4  ;;  %509 = vmatpush3.bf16.msra.mxu0 %v508_v14  ;;  %v514_v21 = vpack.c.bf16 %v292_v17, %v291_v16  ;;  %v511_v26 = vpack.c.bf16 %v210_v24, %v209_v23  ;;  %v294_v27 = vld [vmem:[%s702_s7 + $0x18] sm:$0xff]  ;;  %v433_v29 = vld [vmem:[%s699_s4] ss:$0 sm:$0xff] }
   0x9   :  { %506 = vmatpush3.bf16.msra.mxu1 %v505_v11  ;;  %510 = vmatprep.subr.bf16.mxu0 %v555_v2  ;;  %v517_v28 = vpack.c.bf16 %v294_v27, %v293_v25  ;;  %v437_v34 = vld [vmem:[%s703_s8] ss:$0 sm:$0xff] }
   0xa   :  { %513 = vmatprep.subr.bf16.mxu1 %v555_v2  ;;  %v435_v43 = vld [vmem:[%s701_s6] ss:$0 sm:$0xff]  ;;  %s558_s6 = smov [#allocation2]  }
   0xb   :  { %v376_v45 = vld [vmem:[%s704_s9] sm:$0xff]  ;;  %s423_s8 = sshll.u32 %s558_s6, 4  ;;  %s424_s8 = int_to_ptr.vmem [resolvable:$true] %s423_s8 }
   0xc   :  { %512 = vmatpush3.bf16.msra.mxu0 %v511_v26  ;;  %v384_v59 = vmul.f32 %v376_v45, %v376_v45  ;;  %s531_s9 = scalar_lea.vmem %s424_s8, 128  ;;  %p536_p1 = scmp.lt.s32.totalorder %s424_s8, %s424_s8 }
   0xd   :  { %p532_p0 = scmp.ne.s32.totalorder %s424_s8, %s531_s9  ;;  %p537_p2 = scmp.lt.s32.totalorder %s531_s9, %s531_s9 }
   0xe   :  { %v385_v63 = vmul.f32 -0.5, %v384_v59 }
   0xf   :  { %p538_p3 = por %p537_p2, %p536_p1 }
  0x11   :  { %p539_p4 = pnand %p538_p3, %p532_p0 }
  0xda   :  { %v116_v18 = vpop.f32.mrb[0].mxu0 }
  0xdb   :  { %v117_v19 = vadd.f32 %v431_v15, %v116_v18  ;;  %v464_v20 = vpop.f32.mrb[1].mxu0 }
  0xdd   :  { %v120_v22 = vmax.f32 %v117_v19, 0.0 }
  0xdf   :  { %474 = vmatmul.mubr.msk.f32.vlgmr.msra.gmra.mrb[0].mxu1 %vm132_vm2, %v120_v22 }
  0xe0   :  { %515 = vmatpush3.bf16.msra.mxu1 %v514_v21  ;;  %495 = vmatprep.mubr.msk.f32.mxu1 %vm556_vm0, %v557_v4 }
  0xe1   :  { %516 = vmatprep.subr.bf16.mxu1 %v555_v2 }
  0xe4   :  { %518 = vmatpush3.bf16.msra.mxu1 %v517_v28 }
 0x1b2   :  { %v202_v30 = vpop.f32.mrb[0].mxu1 }
 0x1b3   :  { %v203_v31 = vadd.f32 %v433_v29, %v202_v30  ;;  %v475_v32 = vpop.f32.mrb[1].mxu1 }
 0x1b5   :  { %v206_v33 = vmax.f32 %v203_v31, 0.0 }
 0x1b7   :  { %485 = vmatmul.mubr.msk.f32.vlgmr.msra.gmra.mrb[2].mxu0 %vm132_vm2, %v206_v33  ;;  %496 = vmatmul.mubr.msk.f32.vlgmr.msra.gmra.mrb[2].mxu1 %vm132_vm2, %v206_v33 }
 0x28a   :  { %v287_v35 = vpop.f32.mrb[2].mxu0  ;;  %v368_v36 = vpop.f32.mrb[2].mxu1 }
 0x28b   :  { %v369_v37 = vadd.f32 %v437_v34, %v368_v36  ;;  %v486_v38 = vpop.f32.mrb[3].mxu0  ;;  %v497_v39 = vpop.f32.mrb[3].mxu1  ;;  %v288_v46 = vadd.f32 %v435_v43, %v287_v35 }
 0x28d   :  { %v372_v40 = vmax.f32 %v369_v37, -20.0 }
 0x28f   :  { %v373_v41 = vmin.f32 %v372_v40, 2.0 }
 0x291   :  { %v374_v42 = vmul.f32 1.442695, %v373_v41  ;;  %v386_v5 = vsub.f32 %v385_v63, %v373_v41 }
 0x293   :  { %523 = vpow2.f32 %v374_v42  ;;  %v439_v9 = vadd.f32 -0.9189385, %v386_v5 }
 0x29d   :  { %v524_v44 = vpop.eup %523 }
 0x29e   :  { %v377_v47 = vmul.f32 %v524_v44, %v376_v45 }
 0x2a0   :  { %v378_v48 = vadd.f32 %v377_v47, %v288_v46 }
 0x2a2   :  { %525 = vtanh.f32 %v378_v48  ;;  %v388_v49 = vmul.f32 -2.0, %v378_v48  ;;  %v389_v6 = vsub.f32 0.6931472, %v378_v48 }
 0x2a4   :  { %v391_v50 = vsub.f32 0.0, %v388_v49  ;;  %v390_v2 = vmax.f32 %v388_v49, 0.0 }
 0x2a6   :  { %v394_v51 = vand.u32 2147483647, %v391_v50  ;;  %vm392_vm5 = vcmp.ne.f32.partialorder %v391_v50, %v391_v50 }
 0x2a8   :  { %v395_v52 = vsub.f32 0.0, %v394_v51 }
 0x2aa   :  { %v396_v53 = vmul.f32 1.442695, %v395_v52 }
 0x2ac   :  { %v526_v54 = vpop.eup %525  ;;  %527 = vpow2.f32 %v396_v53 }
 0x2ad   :  { %v380_v55 = vmul.f32 2.0, %v526_v54 }
 0x2af   :  { %383 = vst.msk [vmem:[#allocation2] sm:$0xff] %vm382_vm3, %v380_v55 }
 0x2b6   :  { %v528_v56 = vpop.eup %527 }
 0x2b7   :  { %v398_v57 = vadd.f32 1.0, %v528_v56  ;;  %v401_v58 = vmul.f32 -0.5, %v528_v56  ;;  %v404_v61 = vand.u32 2147483647, %v528_v56 }
 0x2b9   :  { %529 = vlog2.f32 %v398_v57  ;;  %v402_v60 = vadd.f32 1.0, %v401_v58  ;;  %vm405_vm4 = vcmp.lt.f32.partialorder %v404_v61, 0.0004427343 }
 0x2bb   :  { %v403_v1 = vmul.f32 %v528_v56, %v402_v60 }
 0x2c3   :  { %v530_v62 = vpop.eup %529 }
 0x2c4   :  { %v400_v0 = vmul.f32 0.6931472, %v530_v62 }
 0x2c6   :  { %v406_v3 = vsel %vm405_vm4, %v403_v1, %v400_v0 }
 0x2c7   :  { %v407_v4 = vadd.f32 %v406_v3, %v390_v2 }
 0x2c9   :  { %v408_v7 = vsel %vm392_vm5, %v388_v49, %v407_v4 }
 0x2ca   :  { %v409_v8 = vsub.f32 %v389_v6, %v408_v7 }
 0x2cc   :  { %v410_v10 = vmul.f32 2.0, %v409_v8 }
 0x2ce   :  { %v411_v11 = vsub.f32 %v439_v9, %v410_v10 }
 0x2d0   :  { %v412_v12 = vsel %vm382_vm3, %v411_v11, 0.0 }
 0x2d1   :  { %413 = vadd.xlane.f32.xlu0 %v412_v12 }
 0x35e   :  { %v414_v13 = vpop.xlane.xlu0 %413 }
 0x35f   :  { %416 = vst.msk [vmem:[#allocation2] sm:$0xff] %vm415_vm6, %v414_v13 }
 0x360   :  { %542 = shalt.err (!%p539_p4)
}
 0x361   :  { %s543_s0 = scalar_lea.hbm %s705_s10, 128 }
 0x362   :  { %p544_p5 = scmp.ne.s32.totalorder %s705_s10, %s543_s0  ;;  %p547_p6 = scmp.lt.u32.totalorder %s543_s0, %s705_s10 }
 0x364   :  { %p549_p7 = pnand %p547_p6, %p544_p5 }
 0x366   :  { %552 = shalt.err (!%p549_p7)
}
 0x367   :  { %426 = dma.vmem_to_hbm [thread:$0]  %s424_s8, 128, %s705_s10, [#allocation3]  }
 0x368   :  { %553 = dma.done.wait [#allocation3], 128  }
 0x369   :  { %554 = vsyncadd [#allocation3], 4294967168 }
 0x36a   :  { %430 = vsyncpa [#allocation3], 1 }

// kernel: tpu_custom_call.1
= control target key start
LH: loop header
LB: loop body
LE: loop exit
PB: predicated region body
PF: predicated region fallthrough
CT: control target
= control target key end

     0   :  { %v555_v2 = vmov 0.0|0.0   ;;  %vm556_vm0 = vmmov 0   ;;  %v557_v4 = vmov 0.0   ;;  %s695_s0 = inlined_call_operand.vmem [shape: f32[8,16], index: 0, kind: input, shape index: {}]   ;;  %s696_s1 = inlined_call_operand.vmem [shape: f32[16,32], index: 1, kind: input, shape index: {}]   ;;  %s697_s2 = inlined_call_operand.vmem [shape: f32[1,32], index: 2, kind: input, shape index: {}]   ;;  %s698_s3 = inlined_call_operand.vmem [shape: f32[32,32], index: 3, kind: input, shape index: {}]   ;;  %s699_s4 = inlined_call_operand.vmem [shape: f32[1,32], index: 4, kind: input, shape index: {}]   ;;  %s700_s5 = inlined_call_operand.vmem [shape: f32[32,4], index: 5, kind: input, shape index: {}]   ;;  %s701_s6 = inlined_call_operand.vmem [shape: f32[1,4], index: 6, kind: input, shape index: {}]   ;;  %s702_s7 = inlined_call_operand.vmem [shape: f32[32,4], index: 7, kind: input, shape index: {}]   ;;  %s703_s8 = inlined_call_operand.vmem [shape: f32[1,4], index: 8, kind: input, shape index: {}]   ;;  %s704_s9 = inlined_call_operand.vmem [shape: f32[8,4], index: 9, kind: input, shape index: {}]   ;;  %s705_s10 = inlined_call_operand.hbm [shape: f32[8,128], index: 10, kind: output, shape index: {}]  }
   0x1   :  { %v37_v0 = vld [vmem:[%s696_s1] sm:$0xff]  ;;  %v38_v1 = vld [vmem:[%s696_s1 + $0x8] sm:$0xff]  ;;  %498 = vmatprep.subr.bf16.mxu0 %v555_v2  ;;  %462 = vmatprep.mubr.msk.f32.mxu0 %vm556_vm0, %v557_v4  ;;  %381 = vst [vmem:[#allocation2] sm:$0xff] %v557_v4 }
   0x2   :  { %v499_v3 = vpack.c.bf16 %v38_v1, %v37_v0  ;;  %v121_v5 = vld [vmem:[%s698_s3] sm:$0xff]  ;;  %v122_v6 = vld [vmem:[%s698_s3 + $0x8] sm:$0xff]  ;;  %501 = vmatprep.subr.bf16.mxu1 %v555_v2  ;;  %473 = vmatprep.mubr.msk.f32.mxu1 %vm556_vm0, %v557_v4 }
   0x3   :  { %v502_v7 = vpack.c.bf16 %v122_v6, %v121_v5 }
   0x4   :  { %15 = vsyncpa [#allocation3], 0  ;;  %500 = vmatpush3.bf16.msra.mxu0 %v499_v3  ;;  %v36_v8 = vld [vmem:[%s695_s0] sm:$0xff]  ;;  %vm46_vm1 = vcmask 130048   ;;  %v123_v9 = vld [vmem:[%s698_s3 + $0x10] sm:$0xff]  ;;  %vm132_vm2 = vcmask 261120  }
   0x5   :  { %503 = vmatpush3.bf16.msra.mxu1 %v502_v7  ;;  %507 = vmatprep.subr.bf16.mxu0 %v555_v2  ;;  %v124_v10 = vld [vmem:[%s698_s3 + $0x18] sm:$0xff]  ;;  %v207_v12 = vld [vmem:[%s700_s5] sm:$0xff]  ;;  %v208_v13 = vld [vmem:[%s700_s5 + $0x8] sm:$0xff]  ;;  %vm382_vm3 = vcmask 31744   ;;  %vm415_vm6 = vcmask 39968  }
   0x6   :  { %504 = vmatprep.subr.bf16.mxu1 %v555_v2  ;;  %v505_v11 = vpack.c.bf16 %v124_v10, %v123_v9  ;;  %v508_v14 = vpack.c.bf16 %v208_v13, %v207_v12  ;;  %v431_v15 = vld [vmem:[%s697_s2] ss:$0 sm:$0xff]  ;;  %v292_v17 = vld [vmem:[%s702_s7 + $0x8] sm:$0xff]  ;;  %v209_v23 = vld [vmem:[%s700_s5 + $0x10] sm:$0xff] }
   0x7   :  { %463 = vmatmul.mubr.msk.f32.vlgmr.msra.gmra.mrb[0].mxu0 %vm46_vm1, %v36_v8  ;;  %v291_v16 = vld [vmem:[%s702_s7] sm:$0xff]  ;;  %v210_v24 = vld [vmem:[%s700_s5 + $0x18] sm:$0xff]  ;;  %v293_v25 = vld [vmem:[%s702_s7 + $0x10] sm:$0xff] }
   0x8   :  { %484 = vmatprep.mubr.msk.f32.mxu0 %vm556_vm0, %v557_v4  ;;  %509 = vmatpush3.bf16.msra.mxu0 %v508_v14  ;;  %v514_v21 = vpack.c.bf16 %v292_v17, %v291_v16  ;;  %v511_v26 = vpack.c.bf16 %v210_v24, %v209_v23  ;;  %v294_v27 = vld [vmem:[%s702_s7 + $0x18] sm:$0xff]  ;;  %v433_v29 = vld [vmem:[%s699_s4] ss:$0 sm:$0xff] }
   0x9   :  { %506 = vmatpush3.bf16.msra.mxu1 %v505_v11  ;;  %510 = vmatprep.subr.bf16.mxu0 %v555_v2  ;;  %v517_v28 = vpack.c.bf16 %v294_v27, %v293_v25  ;;  %v437_v34 = vld [vmem:[%s703_s8] ss:$0 sm:$0xff] }
   0xa   :  { %513 = vmatprep.subr.bf16.mxu1 %v555_v2  ;;  %v435_v43 = vld [vmem:[%s701_s6] ss:$0 sm:$0xff]  ;;  %s558_s6 = smov [#allocation2]  }
   0xb   :  { %v376_v45 = vld [vmem:[%s704_s9] sm:$0xff]  ;;  %s423_s8 = sshll.u32 %s558_s6, 4  ;;  %s424_s8 = int_to_ptr.vmem [resolvable:$true] %s423_s8 }
   0xc   :  { %512 = vmatpush3.bf16.msra.mxu0 %v511_v26  ;;  %v384_v59 = vmul.f32 %v376_v45, %v376_v45  ;;  %s531_s9 = scalar_lea.vmem %s424_s8, 128  ;;  %p536_p1 = scmp.lt.s32.totalorder %s424_s8, %s424_s8 }
   0xd   :  { %p532_p0 = scmp.ne.s32.totalorder %s424_s8, %s531_s9  ;;  %p537_p2 = scmp.lt.s32.totalorder %s531_s9, %s531_s9 }
   0xe   :  { %v385_v63 = vmul.f32 -0.5, %v384_v59 }
   0xf   :  { %p538_p3 = por %p537_p2, %p536_p1 }
  0x11   :  { %p539_p4 = pnand %p538_p3, %p532_p0 }
  0xda   :  { %v116_v18 = vpop.f32.mrb[0].mxu0 }
  0xdb   :  { %v117_v19 = vadd.f32 %v431_v15, %v116_v18  ;;  %v464_v20 = vpop.f32.mrb[1].mxu0 }
  0xdd   :  { %v120_v22 = vmax.f32 %v117_v19, 0.0 }
  0xdf   :  { %474 = vmatmul.mubr.msk.f32.vlgmr.msra.gmra.mrb[0].mxu1 %vm132_vm2, %v120_v22 }
  0xe0   :  { %515 = vmatpush3.bf16.msra.mxu1 %v514_v21  ;;  %495 = vmatprep.mubr.msk.f32.mxu1 %vm556_vm0, %v557_v4 }
  0xe1   :  { %516 = vmatprep.subr.bf16.mxu1 %v555_v2 }
  0xe4   :  { %518 = vmatpush3.bf16.msra.mxu1 %v517_v28 }
 0x1b2   :  { %v202_v30 = vpop.f32.mrb[0].mxu1 }
 0x1b3   :  { %v203_v31 = vadd.f32 %v433_v29, %v202_v30  ;;  %v475_v32 = vpop.f32.mrb[1].mxu1 }
 0x1b5   :  { %v206_v33 = vmax.f32 %v203_v31, 0.0 }
 0x1b7   :  { %485 = vmatmul.mubr.msk.f32.vlgmr.msra.gmra.mrb[2].mxu0 %vm132_vm2, %v206_v33  ;;  %496 = vmatmul.mubr.msk.f32.vlgmr.msra.gmra.mrb[2].mxu1 %vm132_vm2, %v206_v33 }
 0x28a   :  { %v287_v35 = vpop.f32.mrb[2].mxu0  ;;  %v368_v36 = vpop.f32.mrb[2].mxu1 }
 0x28b   :  { %v369_v37 = vadd.f32 %v437_v34, %v368_v36  ;;  %v486_v38 = vpop.f32.mrb[3].mxu0  ;;  %v497_v39 = vpop.f32.mrb[3].mxu1  ;;  %v288_v46 = vadd.f32 %v435_v43, %v287_v35 }
 0x28d   :  { %v372_v40 = vmax.f32 %v369_v37, -20.0 }
 0x28f   :  { %v373_v41 = vmin.f32 %v372_v40, 2.0 }
 0x291   :  { %v374_v42 = vmul.f32 1.442695, %v373_v41  ;;  %v386_v5 = vsub.f32 %v385_v63, %v373_v41 }
 0x293   :  { %523 = vpow2.f32 %v374_v42  ;;  %v439_v9 = vadd.f32 -0.9189385, %v386_v5 }
 0x29d   :  { %v524_v44 = vpop.eup %523 }
 0x29e   :  { %v377_v47 = vmul.f32 %v524_v44, %v376_v45 }
 0x2a0   :  { %v378_v48 = vadd.f32 %v377_v47, %v288_v46 }
 0x2a2   :  { %525 = vtanh.f32 %v378_v48  ;;  %v388_v49 = vmul.f32 -2.0, %v378_v48  ;;  %v389_v6 = vsub.f32 0.6931472, %v378_v48 }
 0x2a4   :  { %v391_v50 = vsub.f32 0.0, %v388_v49  ;;  %v390_v2 = vmax.f32 %v388_v49, 0.0 }
 0x2a6   :  { %v394_v51 = vand.u32 2147483647, %v391_v50  ;;  %vm392_vm5 = vcmp.ne.f32.partialorder %v391_v50, %v391_v50 }
 0x2a8   :  { %v395_v52 = vsub.f32 0.0, %v394_v51 }
 0x2aa   :  { %v396_v53 = vmul.f32 1.442695, %v395_v52 }
 0x2ac   :  { %v526_v54 = vpop.eup %525  ;;  %527 = vpow2.f32 %v396_v53 }
 0x2ad   :  { %v380_v55 = vmul.f32 2.0, %v526_v54 }
 0x2af   :  { %383 = vst.msk [vmem:[#allocation2] sm:$0xff] %vm382_vm3, %v380_v55 }
 0x2b6   :  { %v528_v56 = vpop.eup %527 }
 0x2b7   :  { %v398_v57 = vadd.f32 1.0, %v528_v56  ;;  %v401_v58 = vmul.f32 -0.5, %v528_v56  ;;  %v404_v61 = vand.u32 2147483647, %v528_v56 }
 0x2b9   :  { %529 = vlog2.f32 %v398_v57  ;;  %v402_v60 = vadd.f32 1.0, %v401_v58  ;;  %vm405_vm4 = vcmp.lt.f32.partialorder %v404_v61, 0.0004427343 }
 0x2bb   :  { %v403_v1 = vmul.f32 %v528_v56, %v402_v60 }
 0x2c3   :  { %v530_v62 = vpop.eup %529 }
 0x2c4   :  { %v400_v0 = vmul.f32 0.6931472, %v530_v62 }
 0x2c6   :  { %v406_v3 = vsel %vm405_vm4, %v403_v1, %v400_v0 }
 0x2c7   :  { %v407_v4 = vadd.f32 %v406_v3, %v390_v2 }
 0x2c9   :  { %v408_v7 = vsel %vm392_vm5, %v388_v49, %v407_v4 }
 0x2ca   :  { %v409_v8 = vsub.f32 %v389_v6, %v408_v7 }
 0x2cc   :  { %v410_v10 = vmul.f32 2.0, %v409_v8 }
 0x2ce   :  { %v411_v11 = vsub.f32 %v439_v9, %v410_v10 }
 0x2d0   :  { %v412_v12 = vsel %vm382_vm3, %v411_v11, 0.0 }
 0x2d1   :  { %413 = vadd.xlane.f32.xlu0 %v412_v12 }
 0x35e   :  { %v414_v13 = vpop.xlane.xlu0 %413 }
 0x35f   :  { %416 = vst.msk [vmem:[#allocation2] sm:$0xff] %vm415_vm6, %v414_v13 }
 0x360   :  { %542 = shalt.err (!%p539_p4)
}
 0x361   :  { %s543_s0 = scalar_lea.hbm %s705_s10, 128 }
 0x362   :  { %p544_p5 = scmp.ne.s32.totalorder %s705_s10, %s543_s0  ;;  %p547_p6 = scmp.lt.u32.totalorder %s543_s0, %s705_s10 }
 0x364   :  { %p549_p7 = pnand %p547_p6, %p544_p5 }
 0x366   :  { %552 = shalt.err (!%p549_p7)
}
 0x367   :  { %426 = dma.vmem_to_hbm [thread:$0]  %s424_s8, 128, %s705_s10, [#allocation3]  }
 0x368   :  { %553 = dma.done.wait [#allocation3], 128  }
 0x369   :  { %554 = vsyncadd [#allocation3], 4294967168 }
 0x36a   :  { %430 = vsyncpa [#allocation3], 1 }

</bundles_post_ra>
